<compile_context>
chip_gen: v7x
topology: tpu7x:2x2x1
jax: 0.10.0
libtpu: 0.0.40
codegen_flags: <defaults>
</compile_context>

<pallas_src>
import functools

import jax
import jax.numpy as jnp
from jax import lax
from jax.experimental import pallas as pl
from jax.experimental.pallas import tpu as pltpu


def _mha_kernel(x_ref, wqkv_ref, bqkv_ref, wp_ref, bp_ref, out_ref, slab_ref,
                *, n_head, head_size):
    bb, T, C = x_ref.shape                    # batch-block, seq, channels
    M = bb * T
    hd = n_head * head_size
    cdt = x_ref.dtype                         # compute dtype for MXU operands
    # Approximate (EUP) reciprocal only in reduced-precision mode so the f32
    # path stays faithful to the pure-JAX reference.
    approx_recip = (cdt != jnp.float32)

    # ---- fused QKV projection for ALL heads & ALL batches in the block -----
    # One lane-dense (M, C) @ (C, 3C) MXU matmul; the sqrt(head_size) score
    # scale is already folded into the Q columns/bias at trace time.
    x2 = x_ref[...].reshape(M, C)
    qkv = jnp.dot(x2, wqkv_ref[...],
                  preferred_element_type=jnp.float32) + bqkv_ref[0]   # (M, 3*hd) f32

    # Causal mask (== tril[:T,:T] != 0).
    row = lax.broadcasted_iota(jnp.int32, (T, T), 0)
    col = lax.broadcasted_iota(jnp.int32, (T, T), 1)
    causal = col <= row
    # TODO(synk): with flash-style kv tiling only diagonal tiles need this mask.

    # ---- attention per (batch, head) ----------------------------------------
    # Head results go into their head-major column slot of a single (M, C) VMEM
    # slab; the output projection then runs ONCE with a full K=C contraction
    # instead of n_head K=head_size matmuls.
    # TODO(synk): head_size(<128)-wide slices are lane-masked at these toy dims;
    # at production sizes process ceil(128/head_size) heads per pass or pad hs.
    # TODO(synk): at real T this loop becomes a flash-style grid with online
    # softmax; at the toy T used here the whole-sequence design fits in VMEM.
    for b in range(bb):
        r0 = b * T
        for h in range(n_head):
            c0 = h * head_size
            q = qkv[r0:r0 + T, c0:c0 + head_size].astype(cdt)         # scale folded in
            k = qkv[r0:r0 + T, hd + c0:hd + c0 + head_size].astype(cdt)
            v = qkv[r0:r0 + T, 2 * hd + c0:2 * hd + c0 + head_size].astype(cdt)

            # q @ k^T without an explicit transpose of k (no XLU copy).
            att = lax.dot_general(q, k, (((1,), (1,)), ((), ())),
                                  preferred_element_type=jnp.float32)  # (T, T) f32
            att = jnp.where(causal, att, -jnp.inf)

            # Numerically stable softmax (scores stay f32, so -inf is safe).
            att = att - jnp.max(att, axis=-1, keepdims=True)
            p = jnp.exp(att)
            p = p * pl.reciprocal(jnp.sum(p, axis=-1, keepdims=True),
                                  approx=approx_recip)
            # TODO(synk): attention dropout omitted (inference / p=0 -> identity)

            head = jnp.dot(p.astype(cdt), v,
                           preferred_element_type=jnp.float32)         # (T, hs) f32
            slab_ref[r0:r0 + T, c0:c0 + head_size] = head.astype(cdt)

    # ---- single output projection over the full concat width ----------------
    out = jnp.dot(slab_ref[...], wp_ref[...],
                  preferred_element_type=jnp.float32) + bp_ref[0]       # (M, C) f32
    # TODO(synk): residual/output dropout omitted (inference -> identity)
    out_ref[...] = out.reshape(bb, T, C).astype(out_ref.dtype)


def multi_head_attention(x, params, *, n_head, head_size, compute_dtype=None,
                         batch_block=None):
    """x: (B, T, C) float32. params: dict of stacked per-head weights.

    compute_dtype: dtype for MXU operands (e.g. jnp.bfloat16 for higher MXU
    rate); accumulation is always f32. None -> use x.dtype.
    batch_block: batches per grid step (None -> all B in one step).
    """
    B, T, C = x.shape
    hd = n_head * head_size
    cdt = x.dtype if compute_dtype is None else jnp.dtype(compute_dtype)
    scale = jnp.asarray(head_size ** 0.5, jnp.float32)   # reference MULTIPLIES by sqrt(hs)

    def fuse(w):  # (H, C, hs) -> (C, H*hs), head-major columns
        return jnp.transpose(w, (1, 0, 2)).reshape(C, hd)

    # Fused QKV weight (C, 3*H*hs) with the score scale folded into the Q part.
    w_qkv = jnp.concatenate(
        [fuse(params["wq"]) * scale, fuse(params["wk"]), fuse(params["wv"])],
        axis=-1).astype(cdt)
    b_qkv = jnp.concatenate(
        [params["bq"].reshape(-1) * scale,
         params["bk"].reshape(-1),
         params["bv"].reshape(-1)]).reshape(1, 3 * hd).astype(jnp.float32)
    wp = params["wp"].astype(cdt)                              # (H*hs, C) = (C, C)
    bp = params["bp"].reshape(1, C).astype(jnp.float32)

    xc = x.astype(cdt)

    # Fatter grid steps: at small B the kernel is grid-step-overhead bound, so
    # process the whole batch (or batch_block) per step.
    bb = B if batch_block is None else min(batch_block, B)
    assert B % bb == 0, "batch_block must divide B"
    grid = (B // bb,)
    # TODO(synk): add a second 'parallel' axis (head-groups / q-tiles) so v7x's
    # two TensorCores both get work when the batch grid is short.

    # Per-generation VMEM budget (v7x: 64 MiB physical; v5e/v6e: 128 MiB).
    try:
        vmem_cap = pltpu.get_tpu_info().vmem_capacity_bytes
    except Exception:
        vmem_cap = 64 * 1024 * 1024
    vmem_limit = int(min(96 * 1024 * 1024, (vmem_cap * 3) // 4))

    kernel = functools.partial(_mha_kernel, n_head=n_head, head_size=head_size)

    # Resident weights/biases: constant block index, single-buffered (no point
    # double-buffering blocks whose index never changes).
    def const(shape):
        return pl.BlockSpec(shape, lambda i: (0,) * len(shape),
                            pipeline_mode=pl.Buffered(1))

    return pl.pallas_call(
        kernel,
        out_shape=jax.ShapeDtypeStruct((B, T, C), x.dtype),
        grid_spec=pltpu.PrefetchScalarGridSpec(
            num_scalar_prefetch=0,
            grid=grid,
            in_specs=[
                pl.BlockSpec((bb, T, C), lambda i: (i, 0, 0)),   # x
                const(w_qkv.shape),                              # fused QKV weight
                const(b_qkv.shape),                              # fused QKV bias (f32)
                const(wp.shape),                                 # output projection
                const(bp.shape),                                 # output proj bias (f32)
            ],
            out_specs=pl.BlockSpec((bb, T, C), lambda i: (i, 0, 0)),
            scratch_shapes=[pltpu.VMEM((bb * T, C), cdt)],       # concat-heads slab
        ),
        compiler_params=pltpu.CompilerParams(
            dimension_semantics=("parallel",),
            vmem_limit_bytes=vmem_limit,
        ),
    )(xc, w_qkv, b_qkv, wp, bp)


def _reference(x, params, *, n_head, head_size):
    """Pure-JAX reference mirroring the PyTorch forward pass (f32)."""
    B, T, C = x.shape
    mask = jnp.tril(jnp.ones((T, T), jnp.float32)) == 0
    heads = []
    for h in range(n_head):
        q = x @ params["wq"][h] + params["bq"][h]
        k = x @ params["wk"][h] + params["bk"][h]
        v = x @ params["wv"][h] + params["bv"][h]
        att = (q @ jnp.swapaxes(k, -2, -1)) * head_size ** 0.5
        att = jnp.where(mask, -jnp.inf, att)
        p = jax.nn.softmax(att, axis=-1)
        heads.append(p @ v)
    concat = jnp.concatenate(heads, axis=-1)
    return concat @ params["wp"] + params["bp"][0]


if __name__ == "__main__":
    # Small GPTConfig-like hyperparameters.
    B, T = 2, 8
    n_embd, n_head = 32, 4
    head_size = n_embd // n_head        # 8
    # (dropout = 0.0 -> identity at inference)

    key = jax.random.PRNGKey(0)
    ks = jax.random.split(key, 9)
    sc = 0.05
    params = {
        "wq": sc * jax.random.normal(ks[0], (n_head, n_embd, head_size), jnp.float32),
        "bq": sc * jax.random.normal(ks[1], (n_head, head_size), jnp.float32),
        "wk": sc * jax.random.normal(ks[2], (n_head, n_embd, head_size), jnp.float32),
        "bk": sc * jax.random.normal(ks[3], (n_head, head_size), jnp.float32),
        "wv": sc * jax.random.normal(ks[4], (n_head, n_embd, head_size), jnp.float32),
        "bv": sc * jax.random.normal(ks[5], (n_head, head_size), jnp.float32),
        "wp": sc * jax.random.normal(ks[6], (n_head * head_size, n_embd), jnp.float32),
        "bp": sc * jax.random.normal(ks[7], (1, n_embd), jnp.float32),
    }
    x = jax.random.normal(ks[8], (B, T, n_embd), jnp.float32)

    ref = _reference(x, params, n_head=n_head, head_size=head_size)

    # Full-precision path: matches the PyTorch-equivalent reference.
    out_f32 = multi_head_attention(x, params, n_head=n_head, head_size=head_size)
    out_f32 = jax.block_until_ready(out_f32)
    assert out_f32.shape == (B, T, n_embd)
    assert jnp.allclose(out_f32, ref, atol=1e-5, rtol=1e-5), "f32 mismatch vs reference"

    # Mixed-precision path: bf16 MXU operands, f32 accumulation.
    out_bf16 = multi_head_attention(x, params, n_head=n_head, head_size=head_size,
                                    compute_dtype=jnp.bfloat16)
    out_bf16 = jax.block_until_ready(out_bf16)
    assert out_bf16.dtype == jnp.float32
    assert jnp.allclose(out_bf16, ref, atol=3e-2, rtol=3e-2), "bf16 mismatch vs reference"

    print("KERNEL_OK")
</pallas_src>

<mosaic_0001>
module attributes {stable_mosaic.version = 11 : i64} {
  func.func @_mha_kernel(%arg0: i32, %arg1: memref<2x8x32xf32, #tpu.memory_space<vmem>>, %arg2: memref<32x96xf32, #tpu.memory_space<vmem>>, %arg3: memref<1x96xf32, #tpu.memory_space<vmem>>, %arg4: memref<32x32xf32, #tpu.memory_space<vmem>>, %arg5: memref<1x32xf32, #tpu.memory_space<vmem>>, %arg6: memref<2x8x32xf32, #tpu.memory_space<vmem>>, %arg7: memref<16x32xf32, #tpu.memory_space<vmem>>) attributes {dimension_semantics = [#tpu.dimension_semantics<parallel>], iteration_bounds = array<i64: 1>, scalar_prefetch = 0 : i64, scratch_operands = 1 : i64, tpu.core_type = #tpu.core_type<tc>, window_params = [{transform_indices = @transform_0, window_bounds = array<i64: 2, 8, 32>}, {pipeline_mode = #tpu.pipeline_mode<synchronous>, transform_indices = @transform_1, window_bounds = array<i64: 32, 96>}, {pipeline_mode = #tpu.pipeline_mode<synchronous>, transform_indices = @transform_2, window_bounds = array<i64: 1, 96>}, {pipeline_mode = #tpu.pipeline_mode<synchronous>, transform_indices = @transform_3, window_bounds = array<i64: 32, 32>}, {pipeline_mode = #tpu.pipeline_mode<synchronous>, transform_indices = @transform_4, window_bounds = array<i64: 1, 32>}, {transform_indices = @transform_5, window_bounds = array<i64: 2, 8, 32>}]} {
    %c0 = arith.constant 0 : index
    %c0_0 = arith.constant 0 : index
    %c0_1 = arith.constant 0 : index
    %0 = vector.load %arg1[%c0, %c0_0, %c0_1] : memref<2x8x32xf32, #tpu.memory_space<vmem>>, vector<2x8x32xf32>
    %1 = vector.shape_cast %0 : vector<2x8x32xf32> to vector<16x32xf32>
    %c0_2 = arith.constant 0 : index
    %c0_3 = arith.constant 0 : index
    %2 = vector.load %arg2[%c0_2, %c0_3] : memref<32x96xf32, #tpu.memory_space<vmem>>, vector<32x96xf32>
    %cst = arith.constant dense<0.000000e+00> : vector<16x96xf32>
    %3 = tpu.matmul %1, %2, %cst {dimension_numbers = #tpu.dot_dimension_numbers<[1], [0], [0], [1], [0, 0, 1, 1], [], []>} : vector<16x32xf32>, vector<32x96xf32>, vector<16x96xf32> -> vector<16x96xf32>
    %c0_4 = arith.constant 0 : index
    %c0_5 = arith.constant 0 : index
    %4 = vector.load %arg3[%c0_4, %c0_5] : memref<1x96xf32, #tpu.memory_space<vmem>>, vector<1x96xf32>
    %5 = vector.shape_cast %4 : vector<1x96xf32> to vector<96xf32>
    %6 = vector.shape_cast %5 : vector<96xf32> to vector<1x96xf32>
    %7 = vector.broadcast %6 : vector<1x96xf32> to vector<16x96xf32>
    %8 = arith.addf %3, %7 : vector<16x96xf32>
    %9 = tpu.iota {dimensions = array<i32: 0>} : vector<8x8xi32>
    %10 = tpu.iota {dimensions = array<i32: 1>} : vector<8x8xi32>
    %11 = arith.cmpi sle, %10, %9 : vector<8x8xi32>
    %12 = vector.extract_strided_slice %8 {offsets = [0, 0], sizes = [8, 8], strides = [1, 1]} : vector<16x96xf32> to vector<8x8xf32>
    %13 = vector.extract_strided_slice %8 {offsets = [0, 32], sizes = [8, 8], strides = [1, 1]} : vector<16x96xf32> to vector<8x8xf32>
    %14 = vector.extract_strided_slice %8 {offsets = [0, 64], sizes = [8, 8], strides = [1, 1]} : vector<16x96xf32> to vector<8x8xf32>
    %cst_6 = arith.constant dense<0.000000e+00> : vector<8x8xf32>
    %15 = tpu.matmul %12, %13, %cst_6 {dimension_numbers = #tpu.dot_dimension_numbers<[1], [1], [0], [0], [0, 0, 1, 0], [], []>} : vector<8x8xf32>, vector<8x8xf32>, vector<8x8xf32> -> vector<8x8xf32>
    %cst_7 = arith.constant 0xFF800000 : f32
    %16 = vector.broadcast %cst_7 : f32 to vector<8x8xf32>
    %17 = arith.select %11, %15, %16 : vector<8x8xi1>, vector<8x8xf32>
    %cst_8 = arith.constant dense<0xFF800000> : vector<8xf32>
    %18 = vector.multi_reduction <maximumf>, %17, %cst_8 [1] : vector<8x8xf32> to vector<8xf32>
    %19 = vector.shape_cast %18 : vector<8xf32> to vector<8x1xf32>
    %20 = vector.broadcast %19 : vector<8x1xf32> to vector<8x8xf32>
    %21 = arith.subf %17, %20 : vector<8x8xf32>
    %22 = math.exp %21 : vector<8x8xf32>
    %cst_9 = arith.constant dense<0.000000e+00> : vector<8xf32>
    %23 = vector.multi_reduction <add>, %22, %cst_9 [1] : vector<8x8xf32> to vector<8xf32>
    %24 = vector.shape_cast %23 : vector<8xf32> to vector<8x1xf32>
    %25 = tpu.reciprocal %24 : vector<8x1xf32> -> vector<8x1xf32>
    %26 = vector.broadcast %25 : vector<8x1xf32> to vector<8x8xf32>
    %27 = arith.mulf %22, %26 : vector<8x8xf32>
    %cst_10 = arith.constant dense<0.000000e+00> : vector<8x8xf32>
    %28 = tpu.matmul %27, %14, %cst_10 {dimension_numbers = #tpu.dot_dimension_numbers<[1], [0], [0], [1], [0, 0, 1, 1], [], []>} : vector<8x8xf32>, vector<8x8xf32>, vector<8x8xf32> -> vector<8x8xf32>
    %c0_11 = arith.constant 0 : index
    %c0_12 = arith.constant 0 : index
    %29 = vector.load %arg7[%c0_11, %c0_12] : memref<16x32xf32, #tpu.memory_space<vmem>>, vector<8x8xf32>
    tpu.vector_store %arg7[%c0_11, %c0_12], %28 {strides = array<i32>} : memref<16x32xf32, #tpu.memory_space<vmem>>, vector<8x8xf32>,
    %30 = vector.extract_strided_slice %8 {offsets = [0, 8], sizes = [8, 8], strides = [1, 1]} : vector<16x96xf32> to vector<8x8xf32>
    %31 = vector.extract_strided_slice %8 {offsets = [0, 40], sizes = [8, 8], strides = [1, 1]} : vector<16x96xf32> to vector<8x8xf32>
    %32 = vector.extract_strided_slice %8 {offsets = [0, 72], sizes = [8, 8], strides = [1, 1]} : vector<16x96xf32> to vector<8x8xf32>
    %cst_13 = arith.constant dense<0.000000e+00> : vector<8x8xf32>
    %33 = tpu.matmul %30, %31, %cst_13 {dimension_numbers = #tpu.dot_dimension_numbers<[1], [1], [0], [0], [0, 0, 1, 0], [], []>} : vector<8x8xf32>, vector<8x8xf32>, vector<8x8xf32> -> vector<8x8xf32>
    %cst_14 = arith.constant 0xFF800000 : f32
    %34 = vector.broadcast %cst_14 : f32 to vector<8x8xf32>
    %35 = arith.select %11, %33, %34 : vector<8x8xi1>, vector<8x8xf32>
    %cst_15 = arith.constant dense<0xFF800000> : vector<8xf32>
    %36 = vector.multi_reduction <maximumf>, %35, %cst_15 [1] : vector<8x8xf32> to vector<8xf32>
    %37 = vector.shape_cast %36 : vector<8xf32> to vector<8x1xf32>
    %38 = vector.broadcast %37 : vector<8x1xf32> to vector<8x8xf32>
    %39 = arith.subf %35, %38 : vector<8x8xf32>
    %40 = math.exp %39 : vector<8x8xf32>
    %cst_16 = arith.constant dense<0.000000e+00> : vector<8xf32>
    %41 = vector.multi_reduction <add>, %40, %cst_16 [1] : vector<8x8xf32> to vector<8xf32>
    %42 = vector.shape_cast %41 : vector<8xf32> to vector<8x1xf32>
    %43 = tpu.reciprocal %42 : vector<8x1xf32> -> vector<8x1xf32>
    %44 = vector.broadcast %43 : vector<8x1xf32> to vector<8x8xf32>
    %45 = arith.mulf %40, %44 : vector<8x8xf32>
    %cst_17 = arith.constant dense<0.000000e+00> : vector<8x8xf32>
    %46 = tpu.matmul %45, %32, %cst_17 {dimension_numbers = #tpu.dot_dimension_numbers<[1], [0], [0], [1], [0, 0, 1, 1], [], []>} : vector<8x8xf32>, vector<8x8xf32>, vector<8x8xf32> -> vector<8x8xf32>
    %c0_18 = arith.constant 0 : index
    %c8 = arith.constant 8 : index
    %47 = vector.load %arg7[%c0_18, %c8] : memref<16x32xf32, #tpu.memory_space<vmem>>, vector<8x8xf32>
    tpu.vector_store %arg7[%c0_18, %c8], %46 {strides = array<i32>} : memref<16x32xf32, #tpu.memory_space<vmem>>, vector<8x8xf32>,
    %48 = vector.extract_strided_slice %8 {offsets = [0, 16], sizes = [8, 8], strides = [1, 1]} : vector<16x96xf32> to vector<8x8xf32>
    %49 = vector.extract_strided_slice %8 {offsets = [0, 48], sizes = [8, 8], strides = [1, 1]} : vector<16x96xf32> to vector<8x8xf32>
    %50 = vector.extract_strided_slice %8 {offsets = [0, 80], sizes = [8, 8], strides = [1, 1]} : vector<16x96xf32> to vector<8x8xf32>
    %cst_19 = arith.constant dense<0.000000e+00> : vector<8x8xf32>
    %51 = tpu.matmul %48, %49, %cst_19 {dimension_numbers = #tpu.dot_dimension_numbers<[1], [1], [0], [0], [0, 0, 1, 0], [], []>} : vector<8x8xf32>, vector<8x8xf32>, vector<8x8xf32> -> vector<8x8xf32>
    %cst_20 = arith.constant 0xFF800000 : f32
    %52 = vector.broadcast %cst_20 : f32 to vector<8x8xf32>
    %53 = arith.select %11, %51, %52 : vector<8x8xi1>, vector<8x8xf32>
    %cst_21 = arith.constant dense<0xFF800000> : vector<8xf32>
    %54 = vector.multi_reduction <maximumf>, %53, %cst_21 [1] : vector<8x8xf32> to vector<8xf32>
    %55 = vector.shape_cast %54 : vector<8xf32> to vector<8x1xf32>
    %56 = vector.broadcast %55 : vector<8x1xf32> to vector<8x8xf32>
    %57 = arith.subf %53, %56 : vector<8x8xf32>
    %58 = math.exp %57 : vector<8x8xf32>
    %cst_22 = arith.constant dense<0.000000e+00> : vector<8xf32>
    %59 = vector.multi_reduction <add>, %58, %cst_22 [1] : vector<8x8xf32> to vector<8xf32>
    %60 = vector.shape_cast %59 : vector<8xf32> to vector<8x1xf32>
    %61 = tpu.reciprocal %60 : vector<8x1xf32> -> vector<8x1xf32>
    %62 = vector.broadcast %61 : vector<8x1xf32> to vector<8x8xf32>
    %63 = arith.mulf %58, %62 : vector<8x8xf32>
    %cst_23 = arith.constant dense<0.000000e+00> : vector<8x8xf32>
    %64 = tpu.matmul %63, %50, %cst_23 {dimension_numbers = #tpu.dot_dimension_numbers<[1], [0], [0], [1], [0, 0, 1, 1], [], []>} : vector<8x8xf32>, vector<8x8xf32>, vector<8x8xf32> -> vector<8x8xf32>
    %c0_24 = arith.constant 0 : index
    %c16 = arith.constant 16 : index
    %65 = vector.load %arg7[%c0_24, %c16] : memref<16x32xf32, #tpu.memory_space<vmem>>, vector<8x8xf32>
    tpu.vector_store %arg7[%c0_24, %c16], %64 {strides = array<i32>} : memref<16x32xf32, #tpu.memory_space<vmem>>, vector<8x8xf32>,
    %66 = vector.extract_strided_slice %8 {offsets = [0, 24], sizes = [8, 8], strides = [1, 1]} : vector<16x96xf32> to vector<8x8xf32>
    %67 = vector.extract_strided_slice %8 {offsets = [0, 56], sizes = [8, 8], strides = [1, 1]} : vector<16x96xf32> to vector<8x8xf32>
    %68 = vector.extract_strided_slice %8 {offsets = [0, 88], sizes = [8, 8], strides = [1, 1]} : vector<16x96xf32> to vector<8x8xf32>
    %cst_25 = arith.constant dense<0.000000e+00> : vector<8x8xf32>
    %69 = tpu.matmul %66, %67, %cst_25 {dimension_numbers = #tpu.dot_dimension_numbers<[1], [1], [0], [0], [0, 0, 1, 0], [], []>} : vector<8x8xf32>, vector<8x8xf32>, vector<8x8xf32> -> vector<8x8xf32>
    %cst_26 = arith.constant 0xFF800000 : f32
    %70 = vector.broadcast %cst_26 : f32 to vector<8x8xf32>
    %71 = arith.select %11, %69, %70 : vector<8x8xi1>, vector<8x8xf32>
    %cst_27 = arith.constant dense<0xFF800000> : vector<8xf32>
    %72 = vector.multi_reduction <maximumf>, %71, %cst_27 [1] : vector<8x8xf32> to vector<8xf32>
    %73 = vector.shape_cast %72 : vector<8xf32> to vector<8x1xf32>
    %74 = vector.broadcast %73 : vector<8x1xf32> to vector<8x8xf32>
    %75 = arith.subf %71, %74 : vector<8x8xf32>
    %76 = math.exp %75 : vector<8x8xf32>
    %cst_28 = arith.constant dense<0.000000e+00> : vector<8xf32>
    %77 = vector.multi_reduction <add>, %76, %cst_28 [1] : vector<8x8xf32> to vector<8xf32>
    %78 = vector.shape_cast %77 : vector<8xf32> to vector<8x1xf32>
    %79 = tpu.reciprocal %78 : vector<8x1xf32> -> vector<8x1xf32>
    %80 = vector.broadcast %79 : vector<8x1xf32> to vector<8x8xf32>
    %81 = arith.mulf %76, %80 : vector<8x8xf32>
    %cst_29 = arith.constant dense<0.000000e+00> : vector<8x8xf32>
    %82 = tpu.matmul %81, %68, %cst_29 {dimension_numbers = #tpu.dot_dimension_numbers<[1], [0], [0], [1], [0, 0, 1, 1], [], []>} : vector<8x8xf32>, vector<8x8xf32>, vector<8x8xf32> -> vector<8x8xf32>
    %c0_30 = arith.constant 0 : index
    %c24 = arith.constant 24 : index
    %83 = vector.load %arg7[%c0_30, %c24] : memref<16x32xf32, #tpu.memory_space<vmem>>, vector<8x8xf32>
    tpu.vector_store %arg7[%c0_30, %c24], %82 {strides = array<i32>} : memref<16x32xf32, #tpu.memory_space<vmem>>, vector<8x8xf32>,
    %84 = vector.extract_strided_slice %8 {offsets = [8, 0], sizes = [8, 8], strides = [1, 1]} : vector<16x96xf32> to vector<8x8xf32>
    %85 = vector.extract_strided_slice %8 {offsets = [8, 32], sizes = [8, 8], strides = [1, 1]} : vector<16x96xf32> to vector<8x8xf32>
    %86 = vector.extract_strided_slice %8 {offsets = [8, 64], sizes = [8, 8], strides = [1, 1]} : vector<16x96xf32> to vector<8x8xf32>
    %cst_31 = arith.constant dense<0.000000e+00> : vector<8x8xf32>
    %87 = tpu.matmul %84, %85, %cst_31 {dimension_numbers = #tpu.dot_dimension_numbers<[1], [1], [0], [0], [0, 0, 1, 0], [], []>} : vector<8x8xf32>, vector<8x8xf32>, vector<8x8xf32> -> vector<8x8xf32>
    %cst_32 = arith.constant 0xFF800000 : f32
    %88 = vector.broadcast %cst_32 : f32 to vector<8x8xf32>
    %89 = arith.select %11, %87, %88 : vector<8x8xi1>, vector<8x8xf32>
    %cst_33 = arith.constant dense<0xFF800000> : vector<8xf32>
    %90 = vector.multi_reduction <maximumf>, %89, %cst_33 [1] : vector<8x8xf32> to vector<8xf32>
    %91 = vector.shape_cast %90 : vector<8xf32> to vector<8x1xf32>
    %92 = vector.broadcast %91 : vector<8x1xf32> to vector<8x8xf32>
    %93 = arith.subf %89, %92 : vector<8x8xf32>
    %94 = math.exp %93 : vector<8x8xf32>
    %cst_34 = arith.constant dense<0.000000e+00> : vector<8xf32>
    %95 = vector.multi_reduction <add>, %94, %cst_34 [1] : vector<8x8xf32> to vector<8xf32>
    %96 = vector.shape_cast %95 : vector<8xf32> to vector<8x1xf32>
    %97 = tpu.reciprocal %96 : vector<8x1xf32> -> vector<8x1xf32>
    %98 = vector.broadcast %97 : vector<8x1xf32> to vector<8x8xf32>
    %99 = arith.mulf %94, %98 : vector<8x8xf32>
    %cst_35 = arith.constant dense<0.000000e+00> : vector<8x8xf32>
    %100 = tpu.matmul %99, %86, %cst_35 {dimension_numbers = #tpu.dot_dimension_numbers<[1], [0], [0], [1], [0, 0, 1, 1], [], []>} : vector<8x8xf32>, vector<8x8xf32>, vector<8x8xf32> -> vector<8x8xf32>
    %c8_36 = arith.constant 8 : index
    %c0_37 = arith.constant 0 : index
    %101 = vector.load %arg7[%c8_36, %c0_37] : memref<16x32xf32, #tpu.memory_space<vmem>>, vector<8x8xf32>
    tpu.vector_store %arg7[%c8_36, %c0_37], %100 {strides = array<i32>} : memref<16x32xf32, #tpu.memory_space<vmem>>, vector<8x8xf32>,
    %102 = vector.extract_strided_slice %8 {offsets = [8, 8], sizes = [8, 8], strides = [1, 1]} : vector<16x96xf32> to vector<8x8xf32>
    %103 = vector.extract_strided_slice %8 {offsets = [8, 40], sizes = [8, 8], strides = [1, 1]} : vector<16x96xf32> to vector<8x8xf32>
    %104 = vector.extract_strided_slice %8 {offsets = [8, 72], sizes = [8, 8], strides = [1, 1]} : vector<16x96xf32> to vector<8x8xf32>
    %cst_38 = arith.constant dense<0.000000e+00> : vector<8x8xf32>
    %105 = tpu.matmul %102, %103, %cst_38 {dimension_numbers = #tpu.dot_dimension_numbers<[1], [1], [0], [0], [0, 0, 1, 0], [], []>} : vector<8x8xf32>, vector<8x8xf32>, vector<8x8xf32> -> vector<8x8xf32>
    %cst_39 = arith.constant 0xFF800000 : f32
    %106 = vector.broadcast %cst_39 : f32 to vector<8x8xf32>
    %107 = arith.select %11, %105, %106 : vector<8x8xi1>, vector<8x8xf32>
    %cst_40 = arith.constant dense<0xFF800000> : vector<8xf32>
    %108 = vector.multi_reduction <maximumf>, %107, %cst_40 [1] : vector<8x8xf32> to vector<8xf32>
    %109 = vector.shape_cast %108 : vector<8xf32> to vector<8x1xf32>
    %110 = vector.broadcast %109 : vector<8x1xf32> to vector<8x8xf32>
    %111 = arith.subf %107, %110 : vector<8x8xf32>
    %112 = math.exp %111 : vector<8x8xf32>
    %cst_41 = arith.constant dense<0.000000e+00> : vector<8xf32>
    %113 = vector.multi_reduction <add>, %112, %cst_41 [1] : vector<8x8xf32> to vector<8xf32>
    %114 = vector.shape_cast %113 : vector<8xf32> to vector<8x1xf32>
    %115 = tpu.reciprocal %114 : vector<8x1xf32> -> vector<8x1xf32>
    %116 = vector.broadcast %115 : vector<8x1xf32> to vector<8x8xf32>
    %117 = arith.mulf %112, %116 : vector<8x8xf32>
    %cst_42 = arith.constant dense<0.000000e+00> : vector<8x8xf32>
    %118 = tpu.matmul %117, %104, %cst_42 {dimension_numbers = #tpu.dot_dimension_numbers<[1], [0], [0], [1], [0, 0, 1, 1], [], []>} : vector<8x8xf32>, vector<8x8xf32>, vector<8x8xf32> -> vector<8x8xf32>
    %c8_43 = arith.constant 8 : index
    %c8_44 = arith.constant 8 : index
    %119 = vector.load %arg7[%c8_43, %c8_44] : memref<16x32xf32, #tpu.memory_space<vmem>>, vector<8x8xf32>
    tpu.vector_store %arg7[%c8_43, %c8_44], %118 {strides = array<i32>} : memref<16x32xf32, #tpu.memory_space<vmem>>, vector<8x8xf32>,
    %120 = vector.extract_strided_slice %8 {offsets = [8, 16], sizes = [8, 8], strides = [1, 1]} : vector<16x96xf32> to vector<8x8xf32>
    %121 = vector.extract_strided_slice %8 {offsets = [8, 48], sizes = [8, 8], strides = [1, 1]} : vector<16x96xf32> to vector<8x8xf32>
    %122 = vector.extract_strided_slice %8 {offsets = [8, 80], sizes = [8, 8], strides = [1, 1]} : vector<16x96xf32> to vector<8x8xf32>
    %cst_45 = arith.constant dense<0.000000e+00> : vector<8x8xf32>
    %123 = tpu.matmul %120, %121, %cst_45 {dimension_numbers = #tpu.dot_dimension_numbers<[1], [1], [0], [0], [0, 0, 1, 0], [], []>} : vector<8x8xf32>, vector<8x8xf32>, vector<8x8xf32> -> vector<8x8xf32>
    %cst_46 = arith.constant 0xFF800000 : f32
    %124 = vector.broadcast %cst_46 : f32 to vector<8x8xf32>
    %125 = arith.select %11, %123, %124 : vector<8x8xi1>, vector<8x8xf32>
    %cst_47 = arith.constant dense<0xFF800000> : vector<8xf32>
    %126 = vector.multi_reduction <maximumf>, %125, %cst_47 [1] : vector<8x8xf32> to vector<8xf32>
    %127 = vector.shape_cast %126 : vector<8xf32> to vector<8x1xf32>
    %128 = vector.broadcast %127 : vector<8x1xf32> to vector<8x8xf32>
    %129 = arith.subf %125, %128 : vector<8x8xf32>
    %130 = math.exp %129 : vector<8x8xf32>
    %cst_48 = arith.constant dense<0.000000e+00> : vector<8xf32>
    %131 = vector.multi_reduction <add>, %130, %cst_48 [1] : vector<8x8xf32> to vector<8xf32>
    %132 = vector.shape_cast %131 : vector<8xf32> to vector<8x1xf32>
    %133 = tpu.reciprocal %132 : vector<8x1xf32> -> vector<8x1xf32>
    %134 = vector.broadcast %133 : vector<8x1xf32> to vector<8x8xf32>
    %135 = arith.mulf %130, %134 : vector<8x8xf32>
    %cst_49 = arith.constant dense<0.000000e+00> : vector<8x8xf32>
    %136 = tpu.matmul %135, %122, %cst_49 {dimension_numbers = #tpu.dot_dimension_numbers<[1], [0], [0], [1], [0, 0, 1, 1], [], []>} : vector<8x8xf32>, vector<8x8xf32>, vector<8x8xf32> -> vector<8x8xf32>
    %c8_50 = arith.constant 8 : index
    %c16_51 = arith.constant 16 : index
    %137 = vector.load %arg7[%c8_50, %c16_51] : memref<16x32xf32, #tpu.memory_space<vmem>>, vector<8x8xf32>
    tpu.vector_store %arg7[%c8_50, %c16_51], %136 {strides = array<i32>} : memref<16x32xf32, #tpu.memory_space<vmem>>, vector<8x8xf32>,
    %138 = vector.extract_strided_slice %8 {offsets = [8, 24], sizes = [8, 8], strides = [1, 1]} : vector<16x96xf32> to vector<8x8xf32>
    %139 = vector.extract_strided_slice %8 {offsets = [8, 56], sizes = [8, 8], strides = [1, 1]} : vector<16x96xf32> to vector<8x8xf32>
    %140 = vector.extract_strided_slice %8 {offsets = [8, 88], sizes = [8, 8], strides = [1, 1]} : vector<16x96xf32> to vector<8x8xf32>
    %cst_52 = arith.constant dense<0.000000e+00> : vector<8x8xf32>
    %141 = tpu.matmul %138, %139, %cst_52 {dimension_numbers = #tpu.dot_dimension_numbers<[1], [1], [0], [0], [0, 0, 1, 0], [], []>} : vector<8x8xf32>, vector<8x8xf32>, vector<8x8xf32> -> vector<8x8xf32>
    %cst_53 = arith.constant 0xFF800000 : f32
    %142 = vector.broadcast %cst_53 : f32 to vector<8x8xf32>
    %143 = arith.select %11, %141, %142 : vector<8x8xi1>, vector<8x8xf32>
    %cst_54 = arith.constant dense<0xFF800000> : vector<8xf32>
    %144 = vector.multi_reduction <maximumf>, %143, %cst_54 [1] : vector<8x8xf32> to vector<8xf32>
    %145 = vector.shape_cast %144 : vector<8xf32> to vector<8x1xf32>
    %146 = vector.broadcast %145 : vector<8x1xf32> to vector<8x8xf32>
    %147 = arith.subf %143, %146 : vector<8x8xf32>
    %148 = math.exp %147 : vector<8x8xf32>
    %cst_55 = arith.constant dense<0.000000e+00> : vector<8xf32>
    %149 = vector.multi_reduction <add>, %148, %cst_55 [1] : vector<8x8xf32> to vector<8xf32>
    %150 = vector.shape_cast %149 : vector<8xf32> to vector<8x1xf32>
    %151 = tpu.reciprocal %150 : vector<8x1xf32> -> vector<8x1xf32>
    %152 = vector.broadcast %151 : vector<8x1xf32> to vector<8x8xf32>
    %153 = arith.mulf %148, %152 : vector<8x8xf32>
    %cst_56 = arith.constant dense<0.000000e+00> : vector<8x8xf32>
    %154 = tpu.matmul %153, %140, %cst_56 {dimension_numbers = #tpu.dot_dimension_numbers<[1], [0], [0], [1], [0, 0, 1, 1], [], []>} : vector<8x8xf32>, vector<8x8xf32>, vector<8x8xf32> -> vector<8x8xf32>
    %c8_57 = arith.constant 8 : index
    %c24_58 = arith.constant 24 : index
    %155 = vector.load %arg7[%c8_57, %c24_58] : memref<16x32xf32, #tpu.memory_space<vmem>>, vector<8x8xf32>
    tpu.vector_store %arg7[%c8_57, %c24_58], %154 {strides = array<i32>} : memref<16x32xf32, #tpu.memory_space<vmem>>, vector<8x8xf32>,
    %c0_59 = arith.constant 0 : index
    %c0_60 = arith.constant 0 : index
    %156 = vector.load %arg7[%c0_59, %c0_60] : memref<16x32xf32, #tpu.memory_space<vmem>>, vector<16x32xf32>
    %c0_61 = arith.constant 0 : index
    %c0_62 = arith.constant 0 : index
    %157 = vector.load %arg4[%c0_61, %c0_62] : memref<32x32xf32, #tpu.memory_space<vmem>>, vector<32x32xf32>
    %cst_63 = arith.constant dense<0.000000e+00> : vector<16x32xf32>
    %158 = tpu.matmul %156, %157, %cst_63 {dimension_numbers = #tpu.dot_dimension_numbers<[1], [0], [0], [1], [0, 0, 1, 1], [], []>} : vector<16x32xf32>, vector<32x32xf32>, vector<16x32xf32> -> vector<16x32xf32>
    %c0_64 = arith.constant 0 : index
    %c0_65 = arith.constant 0 : index
    %159 = vector.load %arg5[%c0_64, %c0_65] : memref<1x32xf32, #tpu.memory_space<vmem>>, vector<1x32xf32>
    %160 = vector.shape_cast %159 : vector<1x32xf32> to vector<32xf32>
    %161 = vector.shape_cast %160 : vector<32xf32> to vector<1x32xf32>
    %162 = vector.broadcast %161 : vector<1x32xf32> to vector<16x32xf32>
    %163 = arith.addf %158, %162 : vector<16x32xf32>
    %164 = vector.shape_cast %163 : vector<16x32xf32> to vector<2x8x32xf32>
    %c0_66 = arith.constant 0 : index
    %c0_67 = arith.constant 0 : index
    %c0_68 = arith.constant 0 : index
    %165 = vector.load %arg6[%c0_66, %c0_67, %c0_68] : memref<2x8x32xf32, #tpu.memory_space<vmem>>, vector<2x8x32xf32>
    tpu.vector_store %arg6[%c0_66, %c0_67, %c0_68], %164 {strides = array<i32>} : memref<2x8x32xf32, #tpu.memory_space<vmem>>, vector<2x8x32xf32>,
    return
  }
  func.func @transform_0(%arg0: i32) -> (i32, i32, i32) {
    %c0_i32 = arith.constant 0 : i32
    %c0_i32_0 = arith.constant 0 : i32
    %c0_i32_1 = arith.constant 0 : i32
    return %arg0, %c0_i32, %c0_i32_0 : i32, i32, i32
  }
  func.func @transform_1(%arg0: i32) -> (i32, i32) {
    %c0_i32 = arith.constant 0 : i32
    %c0_i32_0 = arith.constant 0 : i32
    %c0_i32_1 = arith.constant 0 : i32
    return %c0_i32, %c0_i32_0 : i32, i32
  }
  func.func @transform_2(%arg0: i32) -> (i32, i32) {
    %c0_i32 = arith.constant 0 : i32
    %c0_i32_0 = arith.constant 0 : i32
    %c0_i32_1 = arith.constant 0 : i32
    return %c0_i32, %c0_i32_0 : i32, i32
  }
  func.func @transform_3(%arg0: i32) -> (i32, i32) {
    %c0_i32 = arith.constant 0 : i32
    %c0_i32_0 = arith.constant 0 : i32
    %c0_i32_1 = arith.constant 0 : i32
    return %c0_i32, %c0_i32_0 : i32, i32
  }
  func.func @transform_4(%arg0: i32) -> (i32, i32) {
    %c0_i32 = arith.constant 0 : i32
    %c0_i32_0 = arith.constant 0 : i32
    %c0_i32_1 = arith.constant 0 : i32
    return %c0_i32, %c0_i32_0 : i32, i32
  }
  func.func @transform_5(%arg0: i32) -> (i32, i32, i32) {
    %c0_i32 = arith.constant 0 : i32
    %c0_i32_0 = arith.constant 0 : i32
    %c0_i32_1 = arith.constant 0 : i32
    return %arg0, %c0_i32, %c0_i32_0 : i32, i32, i32
  }
}

</mosaic_0001>

<bundles_post_ra>
// kernel: tpu_custom_call.1
= control target key start
LH: loop header
LB: loop body
LE: loop exit
PB: predicated region body
PF: predicated region fallthrough
CT: control target
= control target key end

     0   :  { %10 = vsyncpa [#allocation4], 0  ;;  %s2295_s0 = inlined_call_operand.hbm [shape: f32[2,8,32], index: 0, kind: input, shape index: {}]   ;;  %s2296_s1 = inlined_call_operand.hbm [shape: f32[32,96], index: 1, kind: input, shape index: {}]   ;;  %s2297_s2 = inlined_call_operand.vmem [shape: f32[1,96], index: 2, kind: input, shape index: {}]   ;;  %s2298_s3 = inlined_call_operand.hbm [shape: f32[32,32], index: 3, kind: input, shape index: {}]   ;;  %s2299_s4 = inlined_call_operand.vmem [shape: f32[1,32], index: 4, kind: input, shape index: {}]   ;;  %s2300_s5 = inlined_call_operand.hbm [shape: f32[2,8,32], index: 5, kind: output, shape index: {}]  }
   0x1   :  { %11 = vsyncpa [#allocation7], 0 }
   0x2   :  { %12 = vsyncpa [#allocation5], 0  ;;  %s1977_s18 = smov [#allocation6]   ;;  %s1978_s20 = smov [#allocation3]  }
   0x3   :  { %s30_s19 = sshll.u32 %s1977_s18, 4  ;;  %s18_s21 = sshll.u32 %s1978_s20, 4  ;;  %s31_s19 = int_to_ptr.vmem [resolvable:$true] %s30_s19  ;;  %s2028_s21 = int_to_ptr.vmem [resolvable:$true] %s18_s21 }
   0x4   :  { %s1883_s24 = scalar_lea.hbm %s2296_s1, 512 }
   0x5   :  { %p1884_p0 = scmp.ne.s32.totalorder %s2296_s1, %s1883_s24  ;;  %p1887_p1 = scmp.lt.u32.totalorder %s1883_s24, %s2296_s1 }
   0x7   :  { %p1889_p2 = pnand %p1887_p1, %p1884_p0 }
   0x9   :  { %1892 = shalt.err (!%p1889_p2)
}
   0xa   :  { %s1893_s29 = scalar_lea.vmem %s31_s19, 512  ;;  %p1898_p4 = scmp.lt.s32.totalorder %s31_s19, %s31_s19 }
   0xb   :  { %p1894_p3 = scmp.ne.s32.totalorder %s31_s19, %s1893_s29  ;;  %p1899_p5 = scmp.lt.s32.totalorder %s1893_s29, %s1893_s29 }
   0xd   :  { %p1900_p6 = por %p1899_p5, %p1898_p4 }
   0xf   :  { %p1901_p7 = pnand %p1900_p6, %p1894_p3 }
  0x11   :  { %1904 = shalt.err (!%p1901_p7)
}
  0x12   :  { %s1979_s30 = smov 128   ;;  %s1980_s6 = smov 8  }
  0x13   :  { %36 = dma.hbm_to_vmem [thread:$0]  %s2296_s1, 512, %s31_s19, [#allocation7], %s1979_s30, %s1979_s30, %s1980_s6  }
  0x14   :  { %s1905_s11 = scalar_lea.hbm %s2295_s0, 256 }
  0x15   :  { %p1906_p8 = scmp.ne.s32.totalorder %s2295_s0, %s1905_s11  ;;  %p1909_p9 = scmp.lt.u32.totalorder %s1905_s11, %s2295_s0 }
  0x17   :  { %p1911_p10 = pnand %p1909_p9, %p1906_p8 }
  0x19   :  { %1914 = shalt.err (!%p1911_p10)
}
  0x1a   :  { %s1915_s16 = scalar_lea.vmem %s2028_s21, 256  ;;  %p1920_p12 = scmp.lt.s32.totalorder %s2028_s21, %s2028_s21 }
  0x1b   :  { %p1916_p11 = scmp.ne.s32.totalorder %s2028_s21, %s1915_s16  ;;  %p1921_p13 = scmp.lt.s32.totalorder %s1915_s16, %s1915_s16 }
  0x1d   :  { %p1922_p0 = por %p1921_p13, %p1920_p12 }
  0x1f   :  { %p1923_p1 = pnand %p1922_p0, %p1916_p11 }
  0x21   :  { %1926 = shalt.err (!%p1923_p1)
}
  0x22   :  { %24 = dma.hbm_to_vmem [thread:$0]  %s2295_s0, 256, %s2028_s21, [#allocation4], %s1979_s30, %s1979_s30, %s1980_s6  }
  0x23   :  { %s1981_s18 = smov [#allocation8]   ;;  %s1927_s23 = scalar_lea.hbm %s2298_s3, 512 }
  0x24   :  { %s44_s19 = sshll.u32 %s1981_s18, 4  ;;  %p1928_p2 = scmp.ne.s32.totalorder %s2298_s3, %s1927_s23  ;;  %s45_s19 = int_to_ptr.vmem [resolvable:$true] %s44_s19 }
  0x25   :  { %p1931_p3 = scmp.lt.u32.totalorder %s1927_s23, %s2298_s3 }
  0x27   :  { %p1933_p4 = pnand %p1931_p3, %p1928_p2 }
  0x29   :  { %1936 = shalt.err (!%p1933_p4)
}
  0x2a   :  { %s1937_s28 = scalar_lea.vmem %s45_s19, 512  ;;  %p1942_p6 = scmp.lt.s32.totalorder %s45_s19, %s45_s19 }
  0x2b   :  { %p1938_p5 = scmp.ne.s32.totalorder %s45_s19, %s1937_s28  ;;  %p1943_p7 = scmp.lt.s32.totalorder %s1937_s28, %s1937_s28 }
  0x2d   :  { %p1944_p8 = por %p1943_p7, %p1942_p6 }
  0x2f   :  { %p1945_p9 = pnand %p1944_p8, %p1938_p5 }
  0x31   :  { %1948 = shalt.err (!%p1945_p9)
}
  0x32   :  { %50 = dma.hbm_to_vmem [thread:$0]  %s2298_s3, 512, %s45_s19, [#allocation7], %s1979_s30, %s1979_s30, %s1980_s6  }
  0x33   :  { %1971 = dma.done.wait [#allocation4], 256  }
  0x34   :  { %1972 = vsyncadd [#allocation4], 4294967040 }
  0x35   :  { %1973 = dma.done.wait [#allocation7], 1024  }
  0x36   :  { %1974 = vsyncadd [#allocation7], 4294966272  ;;  %vm75_vm0 = vcmask 261120   ;;  %v64_v0 = vld [vmem:[#allocation6] sm:$0xff]  ;;  %v65_v1 = vld [vmem:[#allocation6 + $0x8] sm:$0xff]  ;;  %v1982_v8 = vmov 0.0   ;;  %v157_v20 = vlaneseq }
  0x37   :  { %v66_v2 = vld [vmem:[#allocation6 + $0x10] sm:$0xff]  ;;  %v1814_v3 = vpack.c.bf16 %v65_v1, %v64_v0  ;;  %v67_v4 = vld [vmem:[#allocation6 + $0x18] sm:$0xff]  ;;  %1723 = vmatprep.subr.mxu1 %v1982_v8  ;;  %vm1983_vm1 = vmmov 0   ;;  %v1638_v9 = vld [vmem:[%s2297_s2] ss:$0 sm:$0xff]  ;;  %s1984_s7 = smov 64  }
  0x38   :  { %v62_v5 = vld [vmem:[#allocation3] sm:$0xff]  ;;  %v1818_v6 = vpack.c.bf16 %v67_v4, %v66_v2  ;;  %v63_v7 = vld [vmem:[#allocation3 + $0x8] sm:$0xff]  ;;  %1725 = vmatprep.mubr.msk.f32.mxu1 %vm1983_vm1, %v1982_v8  ;;  %s1985_s8 = smov 96   ;;  %s1986_s9 = smov 88   ;;  %vm165_vm2 = vcmask 64512   ;;  %v158_v21 = vshrl.u32 %v157_v20, 7 }
  0x39   :  { %1720 = vmatprep.mubr.msk.f32.mxu0 %vm75_vm0, %v62_v5  ;;  %1815 = vmatprep.subr.bf16.mxu0 %v1814_v3  ;;  %s1987_s10 = smov 120   ;;  %s1988_s2 = smov 80   ;;  %v160_v22 = vand.u32 127, %v157_v20  ;;  %vm499_vm4 = vcmask 130112   ;;  %vm671_vm5 = vcmask 195712   ;;  %vm843_vm6 = vcmask 261312  }
  0x3a   :  { %1817 = vmatpush3.bf16.msra.mxu0 %v1814_v3  ;;  %s1989_s11 = smov 112   ;;  %s1990_s12 = smov 104  }
  0x3b   :  { %1819 = vmatprep.subr.bf16.mxu0 %v1818_v6  ;;  %vm2125_vm3 = vcmp.le.s32.totalorder %v160_v22, %v158_v21  ;;  %s1991_s13 = smov 72   ;;  %s1992_s14 = smov 48  }
  0x3c   :  { %s1993_s15 = smov 56   ;;  %s1994_s16 = smov 40  }
  0x3d   :  { %s1995_s1 = smov 16   ;;  %s1996_s17 = smov 24  }
  0x3e   :  { %1821 = vmatpush3.bf16.msra.mxu0 %v1818_v6  ;;  %s1997_s20 = smov [#allocation9]  }
  0x3f   :  { %1743 = vmatprep.subr.mxu0 %v1982_v8  ;;  %s1625_s22 = sshll.u32 %s1997_s20, 4  ;;  %s1626_s22 = int_to_ptr.vmem [resolvable:$true] %s1625_s22 }
  0x40   :  { %s1949_s23 = scalar_lea.vmem %s1626_s22, 256  ;;  %p1954_p11 = scmp.lt.s32.totalorder %s1626_s22, %s1626_s22 }
  0x41   :  { %1721 = vmatmul.mubr.msk.f32.vlgmr.msra.gmra.mrb[0].mxu0 %vm75_vm0, %v63_v7  ;;  %p1950_p10 = scmp.ne.s32.totalorder %s1626_s22, %s1949_s23  ;;  %p1955_p12 = scmp.lt.s32.totalorder %s1949_s23, %s1949_s23 }
  0x42   :  { %1745 = vmatprep.mubr.msk.f32.mxu0 %vm1983_vm1, %v1982_v8 }
  0x43   :  { %p1956_p13 = por %p1955_p12, %p1954_p11 }
  0x45   :  { %p1957_p0 = pnand %p1956_p13, %p1950_p10 }
 0x114   :  { %v1722_v10 = vpop.f32.mrb[0].mxu0 }
 0x115   :  { %v2091_v11 = vadd.f32 %v1722_v10, %v1638_v9  ;;  %v148_v12 = vpop.f32.mrb[1].mxu0 }
 0x116   :  { %v2093_v13 = vadd.f32 %v1638_v9, %v148_v12 }
 0x118   :  { %252 = vrot.lane.b32.xlu1 %v2093_v13, %s1984_s7  ;;  %163 = vrot.lane.b32.xlu0 %v2093_v13, %s1985_s8 }
 0x11c   :  { %331 = vrot.lane.b32.xlu1 %v2093_v13, %s1986_s9 }
 0x120   :  { %329 = vrot.lane.b32.xlu1 %v2093_v13, %s1987_s10 }
 0x124   :  { %503 = vrot.lane.b32.xlu1 %v2093_v13, %s1988_s2 }
 0x128   :  { %501 = vrot.lane.b32.xlu1 %v2093_v13, %s1989_s11 }
 0x12c   :  { %673 = vrot.lane.b32.xlu1 %v2093_v13, %s1990_s12 }
 0x18a   :  { %v253_v14 = vpop.permute.xlu1 %252  ;;  %v164_v15 = vpop.permute.xlu0 %163 }
 0x18b   :  { %1724 = vmatpush3.xpose.msk.msra.mxu1 %vm165_vm2, %v164_v15 }
 0x18c   :  { %1728 = vmatprep.subr.mxu1 %v1982_v8 }
 0x18e   :  { %v2111_v16 = vpop.permute.xlu1 %331  ;;  %1726 = vmatmul.mubr.msk.f32.vlgmr.msra.gmra.mrb[0].mxu1 %vm165_vm2, %v2093_v13 }
 0x18f   :  { %1729 = vmatpush3.msra.mxu1 %v253_v14  ;;  %1730 = vmatprep.mubr.msk.f32.mxu1 %vm1983_vm1, %v1982_v8 }
 0x190   :  { %1733 = vmatprep.subr.mxu1 %v1982_v8 }
 0x192   :  { %v2118_v17 = vpop.permute.xlu1 %329 }
 0x196   :  { %v504_v18 = vpop.permute.xlu1 %503 }
 0x197   :  { %1744 = vmatpush3.xpose.msk.msra.mxu0 %vm165_vm2, %v504_v18 }
 0x198   :  { %1753 = vmatprep.subr.mxu0 %v1982_v8 }
 0x19a   :  { %v502_v19 = vpop.permute.xlu1 %501 }
 0x19b   :  { %1746 = vmatmul.mubr.msk.f32.vlgmr.msra.gmra.mrb[2].mxu0 %vm165_vm2, %v502_v19 }
 0x19c   :  { %1755 = vmatprep.mubr.msk.f32.mxu0 %vm1983_vm1, %v1982_v8 }
 0x19e   :  { %v674_v36 = vpop.permute.xlu1 %673 }
 0x261   :  { %v236_v24 = vpop.f32.mrb[0].mxu1 }
 0x262   :  { %v240_v25 = vsel %vm2125_vm3, %v236_v24, -inf  ;;  %v1727_v26 = vpop.f32.mrb[1].mxu1 }
 0x263   :  { %v241_v27 = vsel %vm165_vm2, %v240_v25, -inf }
 0x264   :  { %242 = vmax.xlane.f32.xlu0 %v241_v27 }
 0x26e   :  { %v575_v28 = vpop.f32.mrb[2].mxu0 }
 0x26f   :  { %v1747_v29 = vpop.f32.mrb[3].mxu0  ;;  %v2139_v30 = vsel %vm2125_vm3, %v575_v28, -inf }
 0x270   :  { %v580_v31 = vsel %vm165_vm2, %v2139_v30, -inf }
 0x27a   :  { %675 = vrot.lane.b32.xlu0 %v2093_v13, %s1991_s13 }
 0x27e   :  { %1182 = vrot.lane.b32.xlu0 %v2091_v11, %s1989_s11 }
 0x282   :  { %1353 = vrot.lane.b32.xlu0 %v2091_v11, %s1990_s12 }
 0x2a1   :  { %581 = vmax.xlane.f32.xlu0 %v580_v31 }
 0x2f1   :  { %v243_v32 = vpop.xlane.xlu0 %242 }
 0x2f2   :  { %v244_v33 = vsub.f32 %v240_v25, %v243_v32 }
 0x2f4   :  { %v245_v34 = vmul.f32 1.442695, %v244_v33 }
 0x2f5   :  { %v676_v35 = vpop.permute.xlu0 %675 }
 0x2f6   :  { %1851 = vpow2.f32 %v245_v34  ;;  %1754 = vmatpush3.xpose.msk.msra.mxu0 %vm165_vm2, %v676_v35 }
 0x2f7   :  { %1763 = vmatprep.subr.mxu0 %v1982_v8 }
 0x2f9   :  { %1756 = vmatmul.mubr.msk.f32.vlgmr.msra.gmra.mrb[4].mxu0 %vm165_vm2, %v674_v36  ;;  %v1183_v46 = vpop.permute.xlu0 %1182 }
 0x2fa   :  { %1765 = vmatprep.mubr.msk.f32.mxu0 %vm1983_vm1, %v1982_v8 }
 0x2fd   :  { %v1354_v48 = vpop.permute.xlu0 %1353 }
 0x300   :  { %v1852_v37 = vpop.eup %1851 }
 0x301   :  { %v247_v38 = vsel %vm165_vm2, %v1852_v37, 0.0 }
 0x302   :  { %248 = vadd.xlane.f32.xlu1 %v247_v38 }
 0x313   :  { %846 = vrot.lane.b32.xlu1 %v2091_v11, %s1985_s8 }
 0x317   :  { %1013 = vrot.lane.b32.xlu1 %v2091_v11, %s1986_s9 }
 0x31b   :  { %1011 = vrot.lane.b32.xlu1 %v2091_v11, %s1987_s10 }
 0x31f   :  { %1184 = vrot.lane.b32.xlu1 %v2091_v11, %s1988_s2 }
 0x323   :  { %1355 = vrot.lane.b32.xlu1 %v2091_v11, %s1991_s13 }
 0x32e   :  { %v582_v53 = vpop.xlane.xlu0 %581 }
 0x32f   :  { %v583_v56 = vsub.f32 %v2139_v30, %v582_v53 }
 0x331   :  { %v584_v59 = vmul.f32 1.442695, %v583_v56 }
 0x38f   :  { %v249_v39 = vpop.xlane.xlu1 %248 }
 0x390   :  { %1853 = vrcp.f32 %v249_v39 }
 0x391   :  { %1855 = vpow2.f32 %v584_v59 }
 0x393   :  { %v847_v40 = vpop.permute.xlu1 %846 }
 0x394   :  { %1764 = vmatpush3.xpose.msk.msra.mxu0 %vm165_vm2, %v847_v40 }
 0x395   :  { %1773 = vmatprep.subr.mxu0 %v1982_v8 }
 0x397   :  { %v1014_v41 = vpop.permute.xlu1 %1013  ;;  %1766 = vmatmul.mubr.msk.f32.vlgmr.msra.gmra.mrb[6].mxu0 %vm165_vm2, %v2091_v11 }
 0x398   :  { %1774 = vmatpush3.xpose.msk.msra.mxu0 %vm165_vm2, %v1014_v41  ;;  %1775 = vmatprep.mubr.msk.f32.mxu0 %vm1983_vm1, %v1982_v8 }
 0x399   :  { %1783 = vmatprep.subr.mxu0 %v1982_v8 }
 0x39a   :  { %v1854_v42 = vpop.eup %1853 }
 0x39b   :  { %v251_v43 = vmul.f32 %v1854_v42, %v1852_v37  ;;  %v1012_v44 = vpop.permute.xlu1 %1011  ;;  %v2205_v19 = vpop.eup %1855 }
 0x39c   :  { %1776 = vmatmul.mubr.msk.f32.vlgmr.msra.gmra.mrb[8].mxu0 %vm165_vm2, %v1012_v44  ;;  %v586_v22 = vsel %vm165_vm2, %v2205_v19, 0.0 }
 0x39d   :  { %1731 = vmatmul.mubr.msk.f32.vlgmr.msra.gmra.mrb[2].mxu1 %vm165_vm2, %v251_v43  ;;  %1785 = vmatprep.mubr.msk.f32.mxu0 %vm1983_vm1, %v1982_v8 }
 0x39e   :  { %1734 = vmatpush3.xpose.msk.msra.mxu1 %vm165_vm2, %v2111_v16  ;;  %1735 = vmatprep.mubr.msk.f32.mxu1 %vm1983_vm1, %v1982_v8 }
 0x39f   :  { %v1185_v45 = vpop.permute.xlu1 %1184  ;;  %1738 = vmatprep.subr.mxu1 %v1982_v8 }
 0x3a0   :  { %1784 = vmatpush3.xpose.msk.msra.mxu0 %vm165_vm2, %v1185_v45 }
 0x3a1   :  { %1736 = vmatmul.mubr.msk.f32.vlgmr.msra.gmra.mrb[4].mxu1 %vm165_vm2, %v2118_v17  ;;  %1793 = vmatprep.subr.mxu0 %v1982_v8 }
 0x3a2   :  { %1740 = vmatprep.mubr.msk.f32.mxu1 %vm1983_vm1, %v1982_v8 }
 0x3a3   :  { %v1356_v47 = vpop.permute.xlu1 %1355  ;;  %1786 = vmatmul.mubr.msk.f32.vlgmr.msra.gmra.mrb[10].mxu0 %vm165_vm2, %v1183_v46 }
 0x3a4   :  { %1794 = vmatpush3.xpose.msk.msra.mxu0 %vm165_vm2, %v1356_v47  ;;  %1795 = vmatprep.mubr.msk.f32.mxu0 %vm1983_vm1, %v1982_v8 }
 0x3a7   :  { %1796 = vmatmul.mubr.msk.f32.vlgmr.msra.gmra.mrb[12].mxu0 %vm165_vm2, %v1354_v48 }
 0x3cc   :  { %v747_v49 = vpop.f32.mrb[4].mxu0 }
 0x3cd   :  { %v751_v50 = vsel %vm2125_vm3, %v747_v49, -inf  ;;  %v1757_v51 = vpop.f32.mrb[5].mxu0 }
 0x3ce   :  { %v752_v52 = vsel %vm165_vm2, %v751_v50, -inf }
 0x3cf   :  { %753 = vmax.xlane.f32.xlu0 %v752_v52 }
 0x45c   :  { %v754_v54 = vpop.xlane.xlu0 %753 }
 0x45d   :  { %v755_v58 = vsub.f32 %v751_v50, %v754_v54 }
 0x45f   :  { %v756_v0 = vmul.f32 1.442695, %v755_v58 }
 0x461   :  { %1857 = vpow2.f32 %v756_v0 }
 0x46a   :  { %v918_v55 = vpop.f32.mrb[6].mxu0 }
 0x46b   :  { %v1767_v57 = vpop.f32.mrb[7].mxu0  ;;  %v922_v9 = vsel %vm2125_vm3, %v918_v55, -inf  ;;  %v2208_v21 = vpop.eup %1857 }
 0x46c   :  { %v923_v14 = vsel %vm165_vm2, %v922_v9, -inf  ;;  %v758_v23 = vsel %vm165_vm2, %v2208_v21, 0.0 }
 0x46f   :  { %v1085_v60 = vpop.f32.mrb[8].mxu0 }
 0x470   :  { %v1089_v61 = vsel %vm2125_vm3, %v1085_v60, -inf  ;;  %v324_v62 = vpop.f32.mrb[2].mxu1  ;;  %v1777_v63 = vpop.f32.mrb[9].mxu0 }
 0x471   :  { %328 = vst.msk [vmem:[#allocation2] sm:$0xff] %vm165_vm2, %v324_v62  ;;  %v1732_v1 = vpop.f32.mrb[3].mxu1  ;;  %v1090_v2 = vsel %vm165_vm2, %v1089_v61, -inf }
 0x472   :  { %1091 = vmax.xlane.f32.xlu0 %v1090_v2 }
 0x474   :  { %v403_v3 = vpop.f32.mrb[4].mxu1 }
 0x475   :  { %v407_v4 = vsel %vm2125_vm3, %v403_v3, -inf  ;;  %v1737_v5 = vpop.f32.mrb[5].mxu1 }
 0x476   :  { %v1256_v6 = vpop.f32.mrb[10].mxu0  ;;  %v408_v7 = vsel %vm165_vm2, %v407_v4, -inf }
 0x477   :  { %v1787_v10 = vpop.f32.mrb[11].mxu0  ;;  %409 = vmax.xlane.f32.xlu1 %v408_v7  ;;  %v1260_v15 = vsel %vm2125_vm3, %v1256_v6, -inf }
 0x478   :  { %v1261_v20 = vsel %vm165_vm2, %v1260_v15, -inf }
 0x47a   :  { %v1427_v12 = vpop.f32.mrb[12].mxu0 }
 0x47b   :  { %v1431_v16 = vsel %vm2125_vm3, %v1427_v12, -inf  ;;  %v1797_v17 = vpop.f32.mrb[13].mxu0  ;;  %924 = vmax.xlane.f32.xlu1 %v923_v14 }
 0x47c   :  { %v1432_v18 = vsel %vm165_vm2, %v1431_v16, -inf }
 0x47d   :  { %1433 = vmax.xlane.f32.xlu0 %v1432_v18 }
 0x47f   :  { %1262 = vmax.xlane.f32.xlu1 %v1261_v20  ;;  %v1526_v20 = vld [vmem:[#allocation8] sm:$0xff] }
 0x481   :  { %587 = vadd.xlane.f32.xlu0 %v586_v22 }
 0x483   :  { %759 = vadd.xlane.f32.xlu1 %v758_v23  ;;  %v1528_v23 = vld [vmem:[#allocation8 + $0x10] sm:$0xff] }
 0x4ff   :  { %v1092_v24 = vpop.xlane.xlu0 %1091 }
 0x500   :  { %v1093_v25 = vsub.f32 %v1089_v61, %v1092_v24  ;;  %v1529_v24 = vld [vmem:[#allocation8 + $0x18] sm:$0xff] }
 0x502   :  { %v1094_v26 = vmul.f32 1.442695, %v1093_v25 }
 0x504   :  { %1859 = vpow2.f32 %v1094_v26  ;;  %v410_v27 = vpop.xlane.xlu1 %409  ;;  %v1826_v26 = vpack.c.bf16 %v1529_v24, %v1528_v23 }
 0x505   :  { %v411_v45 = vsub.f32 %v407_v4, %v410_v27 }
 0x507   :  { %v412_v46 = vmul.f32 1.442695, %v411_v45 }
 0x508   :  { %v925_v28 = vpop.xlane.xlu1 %924 }
 0x509   :  { %v926_v29 = vsub.f32 %v922_v9, %v925_v28 }
 0x50a   :  { %v1434_v30 = vpop.xlane.xlu0 %1433 }
 0x50b   :  { %v927_v31 = vmul.f32 1.442695, %v926_v29  ;;  %v1435_v32 = vsub.f32 %v1431_v16, %v1434_v30 }
 0x50c   :  { %v1263_v33 = vpop.xlane.xlu1 %1262 }
 0x50d   :  { %1861 = vpow2.f32 %v927_v31  ;;  %v1436_v34 = vmul.f32 1.442695, %v1435_v32  ;;  %v1264_v35 = vsub.f32 %v1260_v15, %v1263_v33 }
 0x50e   :  { %v2214_v36 = vpop.eup %1859  ;;  %v588_v49 = vpop.xlane.xlu0 %587 }
 0x50f   :  { %1863 = vpow2.f32 %v1436_v34  ;;  %v1265_v37 = vmul.f32 1.442695, %v1264_v35  ;;  %v1096_v38 = vsel %vm165_vm2, %v2214_v36, 0.0 }
 0x510   :  { %1097 = vadd.xlane.f32.xlu1 %v1096_v38  ;;  %v760_v53 = vpop.xlane.xlu1 %759 }
 0x511   :  { %1865 = vpow2.f32 %v1265_v37 }
 0x512   :  { %1867 = vpow2.f32 %v412_v46 }
 0x517   :  { %v2218_v39 = vpop.eup %1861 }
 0x518   :  { %v929_v40 = vsel %vm165_vm2, %v2218_v39, 0.0 }
 0x519   :  { %v2222_v41 = vpop.eup %1863  ;;  %930 = vadd.xlane.f32.xlu0 %v929_v40 }
 0x51a   :  { %v1438_v42 = vsel %vm165_vm2, %v2222_v41, 0.0 }
 0x51b   :  { %v2226_v43 = vpop.eup %1865  ;;  %1439 = vadd.xlane.f32.xlu1 %v1438_v42 }
 0x51c   :  { %v1267_v44 = vsel %vm165_vm2, %v2226_v43, 0.0  ;;  %v1868_v47 = vpop.eup %1867 }
 0x51d   :  { %1268 = vadd.xlane.f32.xlu0 %v1267_v44  ;;  %v414_v48 = vsel %vm165_vm2, %v1868_v47, 0.0 }
 0x52c   :  { %591 = vrot.lane.b32.xlu1 %v2093_v13, %s1992_s14 }
 0x533   :  { %419 = vrot.lane.b32.xlu0 %v2093_v13, %s1993_s15 }
 0x537   :  { %934 = vrot.lane.b32.xlu0 %v2091_v11, %s1984_s7 }
 0x53b   :  { %1272 = vrot.lane.b32.xlu0 %v2091_v11, %s1992_s14 }
 0x550   :  { %415 = vadd.xlane.f32.xlu1 %v414_v48 }
 0x561   :  { %763 = vrot.lane.b32.xlu1 %v2093_v13, %s1994_s16 }
 0x565   :  { %1101 = vrot.lane.b32.xlu1 %v2091_v11, %s1993_s15 }
 0x569   :  { %1443 = vrot.lane.b32.xlu1 %v2091_v11, %s1994_s16 }
 0x59d   :  { %v1098_v54 = vpop.xlane.xlu1 %1097 }
 0x5a6   :  { %v931_v50 = vpop.xlane.xlu0 %930 }
 0x5a8   :  { %v1440_v55 = vpop.xlane.xlu1 %1439 }
 0x5aa   :  { %v1269_v51 = vpop.xlane.xlu0 %1268 }
 0x5ac   :  { %v592_v56 = vpop.permute.xlu1 %591 }
 0x5ae   :  { %v420_v52 = vpop.permute.xlu0 %419 }
 0x5af   :  { %1739 = vmatpush3.msra.mxu1 %v420_v52 }
 0x5b0   :  { %1748 = vmatprep.subr.mxu1 %v1982_v8 }
 0x5b2   :  { %v935_v0 = vpop.permute.xlu0 %934 }
 0x5b6   :  { %v1273_v6 = vpop.permute.xlu0 %1272 }
 0x5dd   :  { %v416_v57 = vpop.xlane.xlu1 %415 }
 0x5de   :  { %1869 = vrcp.f32 %v416_v57 }
 0x5df   :  { %1871 = vrcp.f32 %v588_v49 }
 0x5e0   :  { %1873 = vrcp.f32 %v760_v53 }
 0x5e1   :  { %1875 = vrcp.f32 %v931_v50  ;;  %v764_v61 = vpop.permute.xlu1 %763 }
 0x5e2   :  { %1877 = vrcp.f32 %v1098_v54 }
 0x5e3   :  { %1879 = vrcp.f32 %v1269_v51 }
 0x5e4   :  { %1881 = vrcp.f32 %v1440_v55 }
 0x5e5   :  { %v1102_v3 = vpop.permute.xlu1 %1101 }
 0x5e8   :  { %v1870_v13 = vpop.eup %1869 }
 0x5e9   :  { %v418_v58 = vmul.f32 %v1870_v13, %v1868_v47  ;;  %v1872_v59 = vpop.eup %1871  ;;  %v1444_v10 = vpop.permute.xlu1 %1443 }
 0x5ea   :  { %v590_v11 = vmul.f32 %v1872_v59, %v2205_v19  ;;  %v1874_v60 = vpop.eup %1873 }
 0x5eb   :  { %1741 = vmatmul.mubr.msk.f32.vlgmr.msra.gmra.mrb[6].mxu1 %vm165_vm2, %v418_v58  ;;  %v762_v62 = vmul.f32 %v1874_v60, %v2208_v21  ;;  %v1876_v63 = vpop.eup %1875  ;;  %v1527_v21 = vld [vmem:[#allocation8 + $0x8] sm:$0xff] }
 0x5ec   :  { %1749 = vmatpush3.msra.mxu1 %v592_v56  ;;  %1750 = vmatprep.mubr.msk.f32.mxu1 %vm1983_vm1, %v1982_v8  ;;  %v933_v1 = vmul.f32 %v1876_v63, %v2218_v39  ;;  %v1878_v2 = vpop.eup %1877  ;;  %v1822_v22 = vpack.c.bf16 %v1527_v21, %v1526_v20 }
 0x5ed   :  { %1758 = vmatprep.subr.mxu1 %v1982_v8  ;;  %v1100_v4 = vmul.f32 %v1878_v2, %v2214_v36  ;;  %v1880_v5 = vpop.eup %1879 }
 0x5ee   :  { %v1271_v7 = vmul.f32 %v1880_v5, %v2226_v43  ;;  %v1882_v9 = vpop.eup %1881  ;;  %1823 = vmatprep.subr.bf16.mxu0 %v1822_v22 }
 0x5ef   :  { %1751 = vmatmul.mubr.msk.f32.vlgmr.msra.gmra.mrb[8].mxu1 %vm165_vm2, %v590_v11  ;;  %v1442_v12 = vmul.f32 %v1882_v9, %v2222_v41  ;;  %1825 = vmatpush3.bf16.msra.mxu0 %v1822_v22  ;;  %v1665_v41 = vld [vmem:[%s2299_s4] ss:$0 sm:$0xff] }
 0x5f0   :  { %1759 = vmatpush3.msra.mxu1 %v764_v61  ;;  %1760 = vmatprep.mubr.msk.f32.mxu1 %vm1983_vm1, %v1982_v8 }
 0x5f1   :  { %1768 = vmatprep.subr.mxu1 %v1982_v8  ;;  %1827 = vmatprep.subr.bf16.mxu0 %v1826_v26 }
 0x5f3   :  { %1761 = vmatmul.mubr.msk.f32.vlgmr.msra.gmra.mrb[10].mxu1 %vm165_vm2, %v762_v62  ;;  %1829 = vmatpush3.bf16.msra.mxu0 %v1826_v26 }
 0x5f4   :  { %1769 = vmatpush3.msra.mxu1 %v935_v0  ;;  %1770 = vmatprep.mubr.msk.f32.mxu1 %vm1983_vm1, %v1982_v8 }
 0x5f5   :  { %1778 = vmatprep.subr.mxu1 %v1982_v8 }
 0x5f7   :  { %1771 = vmatmul.mubr.msk.f32.vlgmr.msra.gmra.mrb[12].mxu1 %vm165_vm2, %v933_v1 }
 0x5f8   :  { %1779 = vmatpush3.msra.mxu1 %v1102_v3  ;;  %1780 = vmatprep.mubr.msk.f32.mxu1 %vm1983_vm1, %v1982_v8 }
 0x5f9   :  { %1788 = vmatprep.subr.mxu1 %v1982_v8 }
 0x5fb   :  { %1781 = vmatmul.mubr.msk.f32.vlgmr.msra.gmra.mrb[14].mxu1 %vm165_vm2, %v1100_v4 }
 0x5fc   :  { %1789 = vmatpush3.msra.mxu1 %v1273_v6  ;;  %1790 = vmatprep.mubr.msk.f32.mxu1 %vm1983_vm1, %v1982_v8 }
 0x5fd   :  { %1798 = vmatprep.subr.mxu1 %v1982_v8 }
 0x5ff   :  { %1791 = vmatmul.mubr.msk.f32.vlgmr.msra.gmra.mrb[16].mxu1 %vm165_vm2, %v1271_v7 }
 0x600   :  { %1799 = vmatpush3.msra.mxu1 %v1444_v10  ;;  %1800 = vmatprep.mubr.msk.f32.mxu1 %vm1983_vm1, %v1982_v8 }
 0x603   :  { %1801 = vmatmul.mubr.msk.f32.vlgmr.msra.gmra.mrb[18].mxu1 %vm165_vm2, %v1442_v12 }
 0x6be   :  { %v491_v14 = vpop.f32.mrb[6].mxu1 }
 0x6bf   :  { %496 = vrot.lane.b32.xlu0 %v491_v14, %s1980_s6  ;;  %v1742_v15 = vpop.f32.mrb[7].mxu1 }
 0x6c2   :  { %v663_v16 = vpop.f32.mrb[8].mxu1 }
 0x6c3   :  { %668 = vrot.lane.b32.xlu1 %v663_v16, %s1995_s1  ;;  %v1752_v17 = vpop.f32.mrb[9].mxu1 }
 0x6c6   :  { %v835_v18 = vpop.f32.mrb[10].mxu1 }
 0x6c7   :  { %840 = vrot.lane.b32.xlu1 %v835_v18, %s1996_s17  ;;  %v1762_v19 = vpop.f32.mrb[11].mxu1 }
 0x6ca   :  { %v1006_v8 = vpop.f32.mrb[12].mxu1 }
 0x6cb   :  { %1010 = vst.msk [vmem:[#allocation2 + $0x8] sm:$0xff] %vm165_vm2, %v1006_v8  ;;  %v1772_v25 = vpop.f32.mrb[13].mxu1 }
 0x6ce   :  { %v1173_v27 = vpop.f32.mrb[14].mxu1 }
 0x6cf   :  { %1178 = vrot.lane.b32.xlu0 %v1173_v27, %s1980_s6  ;;  %v1782_v28 = vpop.f32.mrb[15].mxu1 }
 0x6d2   :  { %v1344_v29 = vpop.f32.mrb[16].mxu1 }
 0x6d3   :  { %1349 = vrot.lane.b32.xlu0 %v1344_v29, %s1995_s1  ;;  %v1792_v30 = vpop.f32.mrb[17].mxu1 }
 0x6d6   :  { %v1515_v31 = vpop.f32.mrb[18].mxu1 }
 0x6d7   :  { %1520 = vrot.lane.b32.xlu1 %v1515_v31, %s1996_s17  ;;  %v1802_v32 = vpop.f32.mrb[19].mxu1 }
 0x731   :  { %v497_v33 = vpop.permute.xlu0 %496 }
 0x732   :  { %500 = vst.msk [vmem:[#allocation2] sm:$0xff] %vm499_vm4, %v497_v33 }
 0x735   :  { %v669_v34 = vpop.permute.xlu1 %668 }
 0x736   :  { %672 = vst.msk [vmem:[#allocation2] sm:$0xff] %vm671_vm5, %v669_v34 }
 0x739   :  { %v841_v35 = vpop.permute.xlu1 %840 }
 0x73a   :  { %844 = vst.msk [vmem:[#allocation2] sm:$0xff] %vm843_vm6, %v841_v35 }
 0x741   :  { %v1179_v36 = vpop.permute.xlu0 %1178  ;;  %v1524_v37 = vld [vmem:[#allocation2] sm:$0xff] }
 0x742   :  { %1181 = vst.msk [vmem:[#allocation2 + $0x8] sm:$0xff] %vm499_vm4, %v1179_v36  ;;  %1811 = vmatprep.mubr.msk.f32.mxu0 %vm75_vm0, %v1524_v37 }
 0x745   :  { %v1350_v38 = vpop.permute.xlu0 %1349 }
 0x746   :  { %1352 = vst.msk [vmem:[#allocation2 + $0x8] sm:$0xff] %vm671_vm5, %v1350_v38 }
 0x749   :  { %v1521_v39 = vpop.permute.xlu1 %1520 }
 0x74a   :  { %1523 = vst.msk [vmem:[#allocation2 + $0x8] sm:$0xff] %vm843_vm6, %v1521_v39 }
 0x751   :  { %v1525_v40 = vld [vmem:[#allocation2 + $0x8] sm:$0xff] }
 0x752   :  { %1812 = vmatmul.mubr.msk.f32.vlgmr.msra.gmra.mrb[14].mxu0 %vm75_vm0, %v1525_v40 }
 0x825   :  { %v1813_v42 = vpop.f32.mrb[14].mxu0 }
 0x826   :  { %v1615_v43 = vadd.f32 %v1813_v42, %v1665_v41  ;;  %v1609_v44 = vpop.f32.mrb[15].mxu0 }
 0x827   :  { %v1610_v45 = vadd.f32 %v1665_v41, %v1609_v44 }
 0x828   :  { %1619 = vst.msk [vmem:[#allocation9 + $0x8] sm:$0xff] %vm75_vm0, %v1615_v43 }
 0x829   :  { %1618 = vst.msk [vmem:[#allocation9] sm:$0xff] %vm75_vm0, %v1610_v45 }
 0x82a   :  { %1960 = shalt.err (!%p1957_p0)
}
 0x82b   :  { %s1961_s25 = scalar_lea.hbm %s2300_s5, 256 }
 0x82c   :  { %p1962_p1 = scmp.ne.s32.totalorder %s2300_s5, %s1961_s25  ;;  %p1965_p2 = scmp.lt.u32.totalorder %s1961_s25, %s2300_s5 }
 0x82e   :  { %p1967_p3 = pnand %p1965_p2, %p1962_p1 }
 0x830   :  { %1970 = shalt.err (!%p1967_p3)
}
 0x831   :  { %1631 = dma.vmem_to_hbm [thread:$0]  %s1626_s22, 256, %s2300_s5, [#allocation5], %s1979_s30, %s1979_s30, %s1980_s6  }
 0x832   :  { %1975 = dma.done.wait [#allocation5], 256  }
 0x833   :  { %1976 = vsyncadd [#allocation5], 4294967040 }
 0x834   :  { %1635 = vsyncpa [#allocation4], 1 }
 0x835   :  { %1636 = vsyncpa [#allocation7], 1 }
 0x836   :  { %1637 = vsyncpa [#allocation5], 1 }

</bundles_post_ra>
